<compile_context>
chip_gen: v7x
topology: tpu7x:2x2x1
jax: 0.10.0
libtpu: 0.0.40
codegen_flags: <defaults>
</compile_context>

<pallas_src>
import jax
import jax.numpy as jnp
from jax import lax
from jax.experimental import pallas as pl
from jax.experimental.pallas import tpu as pltpu


def _round_up(v, m):
    return ((v + m - 1) // m) * m


def _vq_kernel(x_ref, e_ref, e2_ref, q_ref, idx_ref):
    x = x_ref[...].astype(jnp.float32)            # (tn, D)
    e = e_ref[...].astype(jnp.float32)            # (K, D)  resident codebook
    e2 = e2_ref[...]                              # (1, K)  precomputed ||e||^2
    k = e.shape[0]

    # Row-wise argmin of ||x - e||^2 == argmin of (||e||^2 - 2 x.e); the ||x||^2
    # term is constant per row and omitted.
    xe = lax.dot_general(
        x, e,
        dimension_numbers=(((1,), (1,)), ((), ())),
        preferred_element_type=jnp.float32,
    )                                             # (tn, K)
    dist = e2 - 2.0 * xe                          # (tn, K)

    # First-occurrence argmin (matches torch.argmin on ties).
    col = lax.broadcasted_iota(jnp.int32, dist.shape, 1)                # (tn, K)
    min_d = jnp.min(dist, axis=1, keepdims=True)                        # (tn, 1)
    idx = jnp.min(jnp.where(dist <= min_d, col, jnp.int32(k)), axis=1)  # (tn,)

    # One-hot gather via MXU matmul: exactly reproduces codebook rows in f32.
    onehot = (col == idx[:, None]).astype(jnp.float32)                  # (tn, K)
    quant = jnp.dot(onehot, e, preferred_element_type=jnp.float32)      # (tn, D)

    q_ref[...] = quant.astype(q_ref.dtype)
    idx_ref[...] = idx[None, None, :].astype(jnp.int32)                 # lane-dense


def vq_embedding_forward(x, embedding, *, tile_n=512):
    """Pallas implementation of VQEmbedding.forward.

    Args:
      x: (B, H, W, D) float array, D == embedding_dim.
      embedding: (K, D) codebook.
      tile_n: rows per grid step (multiple of 8; 512 fills the MXU on v6e/v7x).

    Returns:
      quantized (same shape as x), encoding_indices (N, 1) int32,
      perplexity () float32.
    """
    k, d = embedding.shape
    emb = embedding.astype(jnp.float32)
    flat_x = x.reshape(-1, d).astype(jnp.float32)
    n = flat_x.shape[0]

    # Shrink the tile for tiny inputs; keep it a multiple of 8 (sublane).
    tile_n = max(8, min(_round_up(tile_n, 8), _round_up(n, 8)))
    n_pad = tile_n * pl.cdiv(n, tile_n)
    if n_pad != n:
        flat_x = jnp.pad(flat_x, ((0, n_pad - n), (0, 0)))
    num_blocks = n_pad // tile_n

    # Hoisted ||e||^2, computed once outside the grid loop.
    e2 = jnp.sum(emb * emb, axis=1)[None, :]      # (1, K)

    # Rough per-core VMEM budget (bytes): double-buffered x/q/idx tiles,
    # resident codebook + e2, and dist/onehot temporaries.
    est = 4 * (2 * tile_n * d + 2 * tile_n * d + 2 * tile_n
               + 2 * k * d + k + 4 * tile_n * k)
    vmem_limit = None
    if 2 * est > 32 * 1024 * 1024:
        vmem_limit = int(min(2 * est, 64 * 1024 * 1024))  # cap at v7x physical

    quant, idx3d = pl.pallas_call(
        _vq_kernel,
        out_shape=(
            jax.ShapeDtypeStruct((n_pad, d), jnp.float32),          # quantized (flat, padded)
            jax.ShapeDtypeStruct((num_blocks, 1, tile_n), jnp.int32),  # lane-dense indices
        ),
        grid_spec=pltpu.PrefetchScalarGridSpec(
            num_scalar_prefetch=0,
            grid=(num_blocks,),
            in_specs=[
                pl.BlockSpec((tile_n, d), lambda i: (i, 0)),        # x rows
                pl.BlockSpec((k, d), lambda i: (0, 0)),             # resident codebook
                pl.BlockSpec((1, k), lambda i: (0, 0)),             # resident ||e||^2
            ],
            out_specs=[
                pl.BlockSpec((tile_n, d), lambda i: (i, 0)),
                pl.BlockSpec((1, 1, tile_n), lambda i: (i, 0, 0)),
            ],
        ),
        compiler_params=pltpu.CompilerParams(
            dimension_semantics=("parallel",),    # no resident accumulator -> TC-shardable
            vmem_limit_bytes=vmem_limit,
        ),
    )(flat_x, emb, e2)

    idx = idx3d.reshape(-1)[:n]                   # drop tail padding
    quantized = quant[:n].reshape(x.shape)

    # Counts / perplexity computed wrapper-side from the int32 indices (cheap),
    # keeping the kernel's grid axis parallel.
    counts = jnp.zeros((k,), jnp.float32).at[idx].add(1.0)
    avg_probs = counts / jnp.float32(n)
    perplexity = jnp.exp(-jnp.sum(avg_probs * jnp.log(avg_probs + 1e-10)))

    return quantized, idx[:, None].astype(jnp.int32), perplexity


def _reference_forward(x, embedding):
    """Pure-JAX reference mirroring the PyTorch module, for verification."""
    d = embedding.shape[1]
    flat_x = x.reshape(-1, d)
    dist = (
        jnp.sum(flat_x**2, axis=1, keepdims=True)
        + jnp.sum(embedding**2, axis=1)
        - 2.0 * flat_x @ embedding.T
    )
    idx = jnp.argmin(dist, axis=1)
    encodings = jax.nn.one_hot(idx, embedding.shape[0], dtype=jnp.float32)
    quantized = embedding[idx].reshape(x.shape)
    avg_probs = jnp.mean(encodings, axis=0)
    perplexity = jnp.exp(-jnp.sum(avg_probs * jnp.log(avg_probs + 1e-10)))
    return quantized, idx[:, None].astype(jnp.int32), perplexity


def _check(x, embedding):
    quantized, indices, perplexity = vq_embedding_forward(x, embedding)
    jax.block_until_ready((quantized, indices, perplexity))
    q_ref, idx_ref, ppl_ref = _reference_forward(x, embedding)
    assert quantized.shape == x.shape
    assert indices.shape == (x.shape[0] * x.shape[1] * x.shape[2], 1)
    assert jnp.allclose(quantized, q_ref, atol=1e-5)
    assert jnp.array_equal(indices, idx_ref)
    assert jnp.allclose(perplexity, ppl_ref, atol=1e-4)


if __name__ == "__main__":
    num_embeddings = 64   # K
    embedding_dim = 32    # D

    key = jax.random.PRNGKey(0)
    k_x, k_x2, k_e = jax.random.split(key, 3)

    # Deterministic init matching nn.Embedding.weight.data.uniform_(-1/K, 1/K)
    embedding = jax.random.uniform(
        k_e, (num_embeddings, embedding_dim),
        minval=-1.0 / num_embeddings, maxval=1.0 / num_embeddings,
        dtype=jnp.float32,
    )

    # Case 1: B,H,W = 2,4,4 (N = 32).
    x1 = jax.random.normal(k_x, (2, 4, 4, embedding_dim), dtype=jnp.float32) * 0.02
    _check(x1, embedding)

    # Case 2: B,H,W = 2,5,5 (N = 50) — exercises the tile-padding / tail path.
    x2 = jax.random.normal(k_x2, (2, 5, 5, embedding_dim), dtype=jnp.float32) * 0.02
    _check(x2, embedding)

    print("KERNEL_OK")
</pallas_src>

<mosaic_0001>
module attributes {stable_mosaic.version = 11 : i64} {
  func.func @_vq_kernel(%arg0: i32, %arg1: memref<32x32xf32, #tpu.memory_space<vmem>>, %arg2: memref<64x32xf32, #tpu.memory_space<vmem>>, %arg3: memref<1x64xf32, #tpu.memory_space<vmem>>, %arg4: memref<32x32xf32, #tpu.memory_space<vmem>>, %arg5: memref<1x1x32xi32, #tpu.memory_space<vmem>>) attributes {dimension_semantics = [#tpu.dimension_semantics<parallel>], iteration_bounds = array<i64: 1>, scalar_prefetch = 0 : i64, scratch_operands = 0 : i64, tpu.core_type = #tpu.core_type<tc>, window_params = [{transform_indices = @transform_0, window_bounds = array<i64: 32, 32>}, {pipeline_mode = #tpu.pipeline_mode<synchronous>, transform_indices = @transform_1, window_bounds = array<i64: 64, 32>}, {pipeline_mode = #tpu.pipeline_mode<synchronous>, transform_indices = @transform_2, window_bounds = array<i64: 1, 64>}, {transform_indices = @transform_3, window_bounds = array<i64: 32, 32>}, {transform_indices = @transform_4, window_bounds = array<i64: 1, 1, 32>}]} {
    %c0 = arith.constant 0 : index
    %c0_0 = arith.constant 0 : index
    %0 = vector.load %arg1[%c0, %c0_0] : memref<32x32xf32, #tpu.memory_space<vmem>>, vector<32x32xf32>
    %c0_1 = arith.constant 0 : index
    %c0_2 = arith.constant 0 : index
    %1 = vector.load %arg2[%c0_1, %c0_2] : memref<64x32xf32, #tpu.memory_space<vmem>>, vector<64x32xf32>
    %c0_3 = arith.constant 0 : index
    %c0_4 = arith.constant 0 : index
    %2 = vector.load %arg3[%c0_3, %c0_4] : memref<1x64xf32, #tpu.memory_space<vmem>>, vector<1x64xf32>
    %cst = arith.constant dense<0.000000e+00> : vector<32x64xf32>
    %3 = tpu.matmul %0, %1, %cst {dimension_numbers = #tpu.dot_dimension_numbers<[1], [1], [0], [0], [0, 0, 1, 0], [], []>} : vector<32x32xf32>, vector<64x32xf32>, vector<32x64xf32> -> vector<32x64xf32>
    %cst_5 = arith.constant 2.000000e+00 : f32
    %4 = vector.broadcast %cst_5 : f32 to vector<32x64xf32>
    %5 = arith.mulf %4, %3 : vector<32x64xf32>
    %6 = vector.broadcast %2 : vector<1x64xf32> to vector<32x64xf32>
    %7 = arith.subf %6, %5 : vector<32x64xf32>
    %8 = tpu.iota {dimensions = array<i32: 1>} : vector<32x64xi32>
    %cst_6 = arith.constant dense<0x7F800000> : vector<32xf32>
    %9 = vector.multi_reduction <minimumf>, %7, %cst_6 [1] : vector<32x64xf32> to vector<32xf32>
    %10 = vector.shape_cast %9 : vector<32xf32> to vector<32x1xf32>
    %11 = vector.broadcast %10 : vector<32x1xf32> to vector<32x64xf32>
    %12 = arith.cmpf ole, %7, %11 : vector<32x64xf32>
    %c64_i32 = arith.constant 64 : i32
    %13 = vector.broadcast %c64_i32 : i32 to vector<32x64xi32>
    %14 = arith.select %12, %8, %13 : vector<32x64xi1>, vector<32x64xi32>
    %cst_7 = arith.constant dense<2147483647> : vector<32xi32>
    %15 = vector.multi_reduction <minsi>, %14, %cst_7 [1] : vector<32x64xi32> to vector<32xi32>
    %16 = vector.shape_cast %15 : vector<32xi32> to vector<32x1xi32>
    %17 = vector.broadcast %16 : vector<32x1xi32> to vector<32x64xi32>
    %18 = arith.cmpi eq, %8, %17 : vector<32x64xi32>
    %19 = arith.extui %18 : vector<32x64xi1> to vector<32x64xi32>
    %20 = arith.sitofp %19 : vector<32x64xi32> to vector<32x64xf32>
    %cst_8 = arith.constant dense<0.000000e+00> : vector<32x32xf32>
    %21 = tpu.matmul %20, %1, %cst_8 {dimension_numbers = #tpu.dot_dimension_numbers<[1], [0], [0], [1], [0, 0, 1, 1], [], []>} : vector<32x64xf32>, vector<64x32xf32>, vector<32x32xf32> -> vector<32x32xf32>
    %c0_9 = arith.constant 0 : index
    %c0_10 = arith.constant 0 : index
    %22 = vector.load %arg4[%c0_9, %c0_10] : memref<32x32xf32, #tpu.memory_space<vmem>>, vector<32x32xf32>
    tpu.vector_store %arg4[%c0_9, %c0_10], %21 {strides = array<i32>} : memref<32x32xf32, #tpu.memory_space<vmem>>, vector<32x32xf32>,
    %23 = vector.shape_cast %15 : vector<32xi32> to vector<1x1x32xi32>
    %c0_11 = arith.constant 0 : index
    %c0_12 = arith.constant 0 : index
    %c0_13 = arith.constant 0 : index
    %24 = vector.load %arg5[%c0_11, %c0_12, %c0_13] : memref<1x1x32xi32, #tpu.memory_space<vmem>>, vector<1x1x32xi32>
    tpu.vector_store %arg5[%c0_11, %c0_12, %c0_13], %23 {strides = array<i32>} : memref<1x1x32xi32, #tpu.memory_space<vmem>>, vector<1x1x32xi32>,
    return
  }
  func.func @transform_0(%arg0: i32) -> (i32, i32) {
    %c0_i32 = arith.constant 0 : i32
    %c0_i32_0 = arith.constant 0 : i32
    return %arg0, %c0_i32 : i32, i32
  }
  func.func @transform_1(%arg0: i32) -> (i32, i32) {
    %c0_i32 = arith.constant 0 : i32
    %c0_i32_0 = arith.constant 0 : i32
    %c0_i32_1 = arith.constant 0 : i32
    return %c0_i32, %c0_i32_0 : i32, i32
  }
  func.func @transform_2(%arg0: i32) -> (i32, i32) {
    %c0_i32 = arith.constant 0 : i32
    %c0_i32_0 = arith.constant 0 : i32
    %c0_i32_1 = arith.constant 0 : i32
    return %c0_i32, %c0_i32_0 : i32, i32
  }
  func.func @transform_3(%arg0: i32) -> (i32, i32) {
    %c0_i32 = arith.constant 0 : i32
    %c0_i32_0 = arith.constant 0 : i32
    return %arg0, %c0_i32 : i32, i32
  }
  func.func @transform_4(%arg0: i32) -> (i32, i32, i32) {
    %c0_i32 = arith.constant 0 : i32
    %c0_i32_0 = arith.constant 0 : i32
    %c0_i32_1 = arith.constant 0 : i32
    return %arg0, %c0_i32, %c0_i32_0 : i32, i32, i32
  }
}

</mosaic_0001>

<bundles_post_ra>
// kernel: tpu_custom_call.1
= control target key start
LH: loop header
LB: loop body
LE: loop exit
PB: predicated region body
PF: predicated region fallthrough
CT: control target
= control target key end

     0   :  { %10 = vsyncpa [#allocation3], 0  ;;  %vm31_vm0 = vcmask 261120   ;;  %s751_s0 = inlined_call_operand.vmem [shape: f32[32,32], index: 0, kind: input, shape index: {}]   ;;  %s752_s1 = inlined_call_operand.vmem [shape: f32[64,32], index: 1, kind: input, shape index: {}]   ;;  %s753_s2 = inlined_call_operand.vmem [shape: f32[1,64], index: 2, kind: input, shape index: {}]   ;;  %s754_s3 = inlined_call_operand.hbm [shape: f32[32,32], index: 3, kind: output, shape index: {0}]   ;;  %s755_s4 = inlined_call_operand.hbm [shape: s32[1,1,32], index: 4, kind: output, shape index: {1}]  }
   0x1   :  { %v22_v0 = vld [vmem:[%s752_s1] sm:$0xff]  ;;  %v23_v1 = vld [vmem:[%s752_s1 + $0x8] sm:$0xff]  ;;  %v24_v2 = vld [vmem:[%s752_s1 + $0x10] sm:$0xff] }
   0x2   :  { %v509_v3 = vpack.c.bf16 %v23_v1, %v22_v0  ;;  %vm643_vm1 = vmpackc.low %vm31_vm0, %vm31_vm0  ;;  %v25_v5 = vld [vmem:[%s752_s1 + $0x18] sm:$0xff]  ;;  %v18_v7 = vld [vmem:[%s751_s0] sm:$0xff] }
   0x3   :  { %v515_v6 = vpack.c.bf16 %v25_v5, %v24_v2  ;;  %481 = vmatprep.mubr.msk.f32.mxu0 %vm31_vm0, %v18_v7 }
   0x4   :  { %511 = vmatprep.subr.msk.bf16.mxu0 %vm643_vm1, %v509_v3  ;;  %534 = vmatprep.subr.bf16.mxu1 %v509_v3 }
   0x5   :  { %514 = vmatpush3.bf16.xpose.msk.msra.mxu0 %vm643_vm1, %v509_v3 }
   0x6   :  { %11 = vsyncpa [#allocation5], 0  ;;  %517 = vmatprep.subr.msk.bf16.mxu0 %vm643_vm1, %v515_v6  ;;  %v26_v8 = vld [vmem:[%s752_s1 + $0x20] sm:$0xff]  ;;  %v27_v9 = vld [vmem:[%s752_s1 + $0x28] sm:$0xff]  ;;  %536 = vmatpush3.bf16.msra.mxu1 %v509_v3  ;;  %vm169_vm2 = vcmask 523264   ;;  %v167_v34 = vlaneseq  ;;  %vm372_vm12 = vcmask 130112  }
   0x7   :  { %538 = vmatprep.subr.bf16.mxu1 %v515_v6  ;;  %v521_v10 = vpack.c.bf16 %v27_v9, %v26_v8  ;;  %v28_v11 = vld [vmem:[%s752_s1 + $0x30] sm:$0xff]  ;;  %v29_v12 = vld [vmem:[%s752_s1 + $0x38] sm:$0xff]  ;;  %v19_v14 = vld [vmem:[%s751_s0 + $0x8] sm:$0xff]  ;;  %vm379_vm15 = vcmask 195712  }
   0x8   :  { %v527_v13 = vpack.c.bf16 %v29_v12, %v28_v11  ;;  %v20_v15 = vld [vmem:[%s751_s0 + $0x10] sm:$0xff]  ;;  %v21_v16 = vld [vmem:[%s751_s0 + $0x18] sm:$0xff]  ;;  %v432_v19 = vld [vmem:[%s753_s2] ss:$0 sm:$0xff]  ;;  %v701_v35 = vand.u32 127, %v167_v34  ;;  %v364_v9 = vshrl.u32 %v167_v34, 7 }
   0x9   :  { %s603_s0 = smov [#allocation4]  }
   0xa   :  { %540 = vmatpush3.bf16.msra.mxu1 %v515_v6  ;;  %s408_s2 = sshll.u32 %s603_s0, 4  ;;  %s409_s2 = int_to_ptr.vmem [resolvable:$true] %s408_s2 }
   0xb   :  { %542 = vmatprep.subr.bf16.mxu1 %v521_v10  ;;  %s554_s14 = scalar_lea.vmem %s409_s2, 16  ;;  %s558_s15 = scalar_lea.vmem %s409_s2, 32 }
   0xc   :  { %p555_p0 = scmp.ne.s32.totalorder %s409_s2, %s554_s14  ;;  %p559_p1 = scmp.lt.s32.totalorder %s409_s2, %s409_s2 }
   0xd   :  { %520 = vmatpush3.bf16.xpose.msk.msra.mxu0 %vm643_vm1, %v515_v6  ;;  %p560_p2 = scmp.lt.s32.totalorder %s558_s15, %s554_s14 }
   0xe   :  { %523 = vmatprep.subr.msk.bf16.mxu0 %vm643_vm1, %v521_v10  ;;  %544 = vmatpush3.bf16.msra.mxu1 %v521_v10 }
   0xf   :  { %546 = vmatprep.subr.bf16.mxu1 %v527_v13  ;;  %p561_p3 = por %p560_p2, %p559_p1 }
  0x11   :  { %p562_p4 = pnand %p561_p3, %p555_p0 }
  0x12   :  { %548 = vmatpush3.bf16.msra.mxu1 %v527_v13 }
  0x15   :  { %526 = vmatpush3.bf16.xpose.msk.msra.mxu0 %vm643_vm1, %v521_v10 }
  0x16   :  { %529 = vmatprep.subr.msk.bf16.mxu0 %vm643_vm1, %v527_v13 }
  0x1d   :  { %532 = vmatpush3.bf16.xpose.msk.msra.mxu0 %vm643_vm1, %v527_v13  ;;  %vm386_vm1 = vcmask 261312  }
  0x24   :  { %482 = vmatmul.mubr.msk.f32.vlgmr.msra.gmra.mrb[0].mxu0 %vm31_vm0, %v19_v14 }
  0x25   :  { %484 = vmatprep.mubr.msk.f32.mxu0 %vm31_vm0, %v20_v15  ;;  %v367_v15 = vadd.s32 4294967288, %v701_v35 }
  0x28   :  { %485 = vmatmul.mubr.msk.f32.gmra.mrb[2].mxu0 %vm31_vm0, %v21_v16  ;;  %v374_v16 = vadd.s32 4294967280, %v701_v35 }
  0xf7   :  { %v483_v17 = vpop.f32.mrb[0].mxu0 }
  0xf8   :  { %v134_v18 = vpop.f32.mrb[1].mxu0  ;;  %v154_v20 = vmul.f32 2.0, %v483_v17  ;;  %v365_v17 = vsub.s32 %v701_v35, %v364_v9 }
  0xf9   :  { %v153_v21 = vmul.f32 2.0, %v134_v18 }
  0xfa   :  { %v164_v28 = vsub.f32 %v432_v19, %v154_v20 }
  0xfb   :  { %v486_v22 = vpop.f32.mrb[2].mxu0  ;;  %v163_v23 = vsub.f32 %v432_v19, %v153_v21 }
  0xfc   :  { %v144_v24 = vpop.f32.mrb[3].mxu0  ;;  %v156_v25 = vmul.f32 2.0, %v486_v22  ;;  %v173_v30 = vsel %vm169_vm2, %v164_v28, inf }
  0xfd   :  { %v155_v26 = vmul.f32 2.0, %v144_v24  ;;  %v170_v27 = vsel %vm169_vm2, %v163_v23, inf  ;;  %v381_v24 = vadd.s32 4294967272, %v701_v35 }
  0xfe   :  { %171 = vmin.xlane.f32.xlu0 %v170_v27  ;;  %v166_v32 = vsub.f32 %v432_v19, %v156_v25 }
  0xff   :  { %v165_v29 = vsub.f32 %v432_v19, %v155_v26  ;;  %v370_v26 = vsub.s32 %v367_v15, %v364_v9  ;;  %v384_v34 = vsub.s32 %v381_v24, %v364_v9 }
 0x100   :  { %v179_v33 = vsel %vm169_vm2, %v166_v32, inf }
 0x101   :  { %v176_v31 = vsel %vm169_vm2, %v165_v29, inf }
 0x102   :  { %174 = vmin.xlane.f32.xlu0 %v173_v30  ;;  %177 = vmin.xlane.f32.xlu1 %v176_v31 }
 0x106   :  { %180 = vmin.xlane.f32.xlu1 %v179_v33 }
 0x18b   :  { %v172_v36 = vpop.xlane.xlu0 %171 }
 0x18c   :  { %vm182_vm3 = vcmp.le.f32.partialorder %v163_v23, %v172_v36 }
 0x18d   :  { %v186_v37 = vsel %vm182_vm3, %v701_v35, 64 }
 0x18e   :  { %v190_v38 = vsel %vm169_vm2, %v186_v37, 2147483647 }
 0x18f   :  { %v175_v39 = vpop.xlane.xlu0 %174  ;;  %v178_v40 = vpop.xlane.xlu1 %177  ;;  %v192_v41 = vshra.s32 %v190_v38, 16  ;;  %v191_v56 = vand.u32 65535, %v190_v38 }
 0x190   :  { %vm183_vm4 = vcmp.le.f32.partialorder %v164_v28, %v175_v39  ;;  %vm184_vm5 = vcmp.le.f32.partialorder %v165_v29, %v178_v40  ;;  %v377_v28 = vsub.s32 %v374_v16, %v364_v9  ;;  %v602_v29 = vmov 0.0  }
 0x191   :  { %v187_v42 = vsel %vm183_vm4, %v701_v35, 64  ;;  %v188_v43 = vsel %vm184_vm5, %v701_v35, 64  ;;  %v194_v44 = vcvt.s32.f32 %v192_v41  ;;  %v193_v58 = vcvt.s32.f32 %v191_v56 }
 0x192   :  { %v205_v45 = vsel %vm169_vm2, %v187_v42, 2147483647  ;;  %v220_v46 = vsel %vm169_vm2, %v188_v43, 2147483647  ;;  %vm388_vm4 = vcmask 253952  }
 0x193   :  { %195 = vmin.xlane.f32.xlu0 %v194_v44  ;;  %v181_v47 = vpop.xlane.xlu1 %180  ;;  %v207_v48 = vshra.s32 %v205_v45, 16  ;;  %v222_v49 = vshra.s32 %v220_v46, 16  ;;  %v221_v59 = vand.u32 65535, %v220_v46  ;;  %v206_v60 = vand.u32 65535, %v205_v45 }
 0x194   :  { %vm185_vm6 = vcmp.le.f32.partialorder %v166_v32, %v181_v47 }
 0x195   :  { %v189_v50 = vsel %vm185_vm6, %v701_v35, 64  ;;  %v209_v51 = vcvt.s32.f32 %v207_v48  ;;  %v224_v52 = vcvt.s32.f32 %v222_v49  ;;  %v223_v0 = vcvt.s32.f32 %v221_v59 }
 0x196   :  { %v235_v53 = vsel %vm169_vm2, %v189_v50, 2147483647  ;;  %v208_v1 = vcvt.s32.f32 %v206_v60 }
 0x197   :  { %210 = vmin.xlane.f32.xlu1 %v209_v51  ;;  %225 = vmin.xlane.f32.xlu0 %v224_v52  ;;  %v237_v54 = vshra.s32 %v235_v53, 16  ;;  %v236_v2 = vand.u32 65535, %v235_v53 }
 0x199   :  { %v239_v55 = vcvt.s32.f32 %v237_v54  ;;  %v238_v6 = vcvt.s32.f32 %v236_v2 }
 0x19b   :  { %240 = vmin.xlane.f32.xlu1 %v239_v55 }
 0x220   :  { %v196_v57 = vpop.xlane.xlu0 %195 }
 0x221   :  { %vm197_vm7 = vcmp.eq.f32.partialorder %v194_v44, %v196_v57  ;;  %v202_v8 = vcvt.f32.s32 %v196_v57 }
 0x222   :  { %v198_v61 = vsel %vm197_vm7, %v193_v58, inf }
 0x223   :  { %199 = vmin.xlane.f32.xlu0 %v198_v61  ;;  %v203_v13 = vshll.u32 %v202_v8, 16 }
 0x224   :  { %v226_v62 = vpop.xlane.xlu0 %225  ;;  %v211_v63 = vpop.xlane.xlu1 %210 }
 0x225   :  { %vm227_vm8 = vcmp.eq.f32.partialorder %v224_v52, %v226_v62  ;;  %vm212_vm9 = vcmp.eq.f32.partialorder %v209_v51, %v211_v63  ;;  %v232_v10 = vcvt.f32.s32 %v226_v62  ;;  %v217_v11 = vcvt.f32.s32 %v211_v63 }
 0x226   :  { %v228_v3 = vsel %vm227_vm8, %v223_v0, inf  ;;  %v213_v4 = vsel %vm212_vm9, %v208_v1, inf }
 0x227   :  { %229 = vmin.xlane.f32.xlu0 %v228_v3  ;;  %214 = vmin.xlane.f32.xlu1 %v213_v4  ;;  %v233_v19 = vshll.u32 %v232_v10, 16  ;;  %v218_v20 = vshll.u32 %v217_v11, 16 }
 0x228   :  { %v241_v5 = vpop.xlane.xlu1 %240 }
 0x229   :  { %vm242_vm10 = vcmp.eq.f32.partialorder %v239_v55, %v241_v5  ;;  %v247_v21 = vcvt.f32.s32 %v241_v5 }
 0x22a   :  { %v243_v7 = vsel %vm242_vm10, %v238_v6, inf }
 0x22b   :  { %244 = vmin.xlane.f32.xlu1 %v243_v7  ;;  %v248_v33 = vshll.u32 %v247_v21, 16 }
 0x2b0   :  { %v200_v12 = vpop.xlane.xlu0 %199 }
 0x2b1   :  { %v201_v14 = vcvt.f32.s32 %v200_v12 }
 0x2b3   :  { %v204_v18 = vadd.s32 %v203_v13, %v201_v14 }
 0x2b4   :  { %v230_v22 = vpop.xlane.xlu0 %229  ;;  %v215_v23 = vpop.xlane.xlu1 %214 }
 0x2b5   :  { %v231_v25 = vcvt.f32.s32 %v230_v22  ;;  %v216_v27 = vcvt.f32.s32 %v215_v23  ;;  %vm250_vm11 = vcmp.eq.s32.totalorder %v701_v35, %v204_v18  ;;  %v366_v37 = vrot.slane %v204_v18, %v365_v17 }
 0x2b6   :  { %v433_v30 = vsel %vm250_vm11, 1.0, %v602_v29 }
 0x2b7   :  { %v234_v31 = vadd.s32 %v233_v19, %v231_v25  ;;  %v219_v32 = vadd.s32 %v218_v20, %v216_v27  ;;  %503 = vmatprep.mubr.msk.f32.mxu1 %vm169_vm2, %v433_v30 }
 0x2b8   :  { %v245_v36 = vpop.xlane.xlu1 %244 }
 0x2b9   :  { %vm252_vm13 = vcmp.eq.s32.totalorder %v701_v35, %v234_v31  ;;  %v371_v38 = vrot.slane %v219_v32, %v370_v26  ;;  %v246_v39 = vcvt.f32.s32 %v245_v36  ;;  %v378_v40 = vrot.slane %v234_v31, %v377_v28 }
 0x2ba   :  { %vm251_vm14 = vcmp.eq.s32.totalorder %v701_v35, %v219_v32  ;;  %v435_v41 = vsel %vm252_vm13, 1.0, %v602_v29 }
 0x2bb   :  { %v249_v42 = vadd.s32 %v248_v33, %v246_v39  ;;  %v434_v43 = vsel %vm251_vm14, 1.0, %v602_v29  ;;  %v373_v44 = vsel %vm372_vm12, %v371_v38, %v366_v37 }
 0x2bc   :  { %504 = vmatmul.mubr.msk.f32.vlgmr.msra.gmra.mrb[0].mxu1 %vm169_vm2, %v434_v43  ;;  %v380_v47 = vsel %vm379_vm15, %v378_v40, %v373_v44 }
 0x2bd   :  { %vm253_vm3 = vcmp.eq.s32.totalorder %v701_v35, %v249_v42  ;;  %v385_v45 = vrot.slane %v249_v42, %v384_v34  ;;  %506 = vmatprep.mubr.msk.f32.mxu1 %vm169_vm2, %v435_v41 }
 0x2be   :  { %v436_v46 = vsel %vm253_vm3, 1.0, %v602_v29 }
 0x2bf   :  { %v387_v48 = vsel %vm386_vm1, %v385_v45, %v380_v47 }
 0x2c0   :  { %507 = vmatmul.mubr.msk.f32.gmra.mrb[2].mxu1 %vm169_vm2, %v436_v46  ;;  %389 = vst.msk [vmem:[#allocation4] sm:$0x1] %vm388_vm4, %v387_v48 }
 0x2c1   :  { %565 = shalt.err (!%p562_p4)
}
 0x2c2   :  { %s566_s18 = scalar_lea.hbm %s755_s4, 16 }
 0x2c3   :  { %p567_p5 = scmp.ne.s32.totalorder %s755_s4, %s566_s18  ;;  %p570_p6 = scmp.lt.u32.totalorder %s566_s18, %s755_s4 }
 0x2c5   :  { %p572_p7 = pnand %p570_p6, %p567_p5 }
 0x2c7   :  { %575 = shalt.err (!%p572_p7)
}
 0x2c8   :  { %411 = dma.vmem_to_hbm [thread:$0]  %s409_s2, 16, %s755_s4, [#allocation5]  }
 0x2c9   :  { %s604_s25 = smov [#allocation2]  }
 0x2ca   :  { %s395_s26 = sshll.u32 %s604_s25, 4  ;;  %s396_s26 = int_to_ptr.vmem [resolvable:$true] %s395_s26 }
 0x2cb   :  { %s576_s27 = scalar_lea.vmem %s396_s26, 512  ;;  %p581_p9 = scmp.lt.s32.totalorder %s396_s26, %s396_s26 }
 0x2cc   :  { %p577_p8 = scmp.ne.s32.totalorder %s396_s26, %s576_s27  ;;  %p582_p10 = scmp.lt.s32.totalorder %s576_s27, %s576_s27 }
 0x2ce   :  { %p583_p11 = por %p582_p10, %p581_p9 }
 0x2d0   :  { %p584_p12 = pnand %p583_p11, %p577_p8 }
 0x38f   :  { %v505_v35 = vpop.f32.mrb[0].mxu1 }
 0x390   :  { %360 = vst.msk [vmem:[#allocation2 + $0x8] sm:$0xff] %vm31_vm0, %v505_v35  ;;  %v340_v49 = vpop.f32.mrb[1].mxu1 }
 0x391   :  { %359 = vst.msk [vmem:[#allocation2] sm:$0xff] %vm31_vm0, %v340_v49 }
 0x393   :  { %v508_v50 = vpop.f32.mrb[2].mxu1 }
 0x394   :  { %362 = vst.msk [vmem:[#allocation2 + $0x18] sm:$0xff] %vm31_vm0, %v508_v50  ;;  %v350_v51 = vpop.f32.mrb[3].mxu1 }
 0x395   :  { %361 = vst.msk [vmem:[#allocation2 + $0x10] sm:$0xff] %vm31_vm0, %v350_v51 }
 0x396   :  { %587 = shalt.err (!%p584_p12)
}
 0x397   :  { %s588_s29 = scalar_lea.hbm %s754_s3, 512 }
 0x398   :  { %p589_p13 = scmp.ne.s32.totalorder %s754_s3, %s588_s29  ;;  %p592_p0 = scmp.lt.u32.totalorder %s588_s29, %s754_s3 }
 0x39a   :  { %p594_p1 = pnand %p592_p0, %p589_p13 }
 0x39c   :  { %597 = shalt.err (!%p594_p1)
}
 0x39d   :  { %s605_s7 = smov 128   ;;  %s606_s8 = smov 8  }
 0x39e   :  { %401 = dma.vmem_to_hbm [thread:$0]  %s396_s26, 512, %s754_s3, [#allocation3], %s605_s7, %s605_s7, %s606_s8  }
 0x39f   :  { %598 = dma.done.wait [#allocation3], 512  }
 0x3a0   :  { %599 = vsyncadd [#allocation3], 4294966784 }
 0x3a1   :  { %600 = dma.done.wait [#allocation5], 16  }
 0x3a2   :  { %601 = vsyncadd [#allocation5], 4294967280 }
 0x3a3   :  { %418 = vsyncpa [#allocation3], 1 }
 0x3a4   :  { %419 = vsyncpa [#allocation5], 1 }

</bundles_post_ra>
